<compile_context>
chip_gen: v6e
topology: v6e:2x2x1
jax: 0.10.0
libtpu: 0.0.40
codegen_flags: <defaults>
</compile_context>

<pallas_src>
import functools

import jax
import jax.numpy as jnp
from jax.experimental import pallas as pl
from jax.experimental.pallas import tpu as pltpu


def _vmem_limit(need_bytes):
    # Explicit scoped-VMEM budget: enough for the tiles + margin, capped well under
    # v7x's 64 MiB physical VMEM (also raises v5e's 16 MiB default when needed).
    return int(min(max(need_bytes + (4 << 20), 32 << 20), 56 << 20))


# ---------------------------------------------------------------------------
# Fused projection + head split:
#   out[b, h, l, :] = (x[b, l, :] @ W[h*hd:(h+1)*hd, :].T + bias[h*hd:(h+1)*hd])
# Output layout is (B, H, L, hd), so no XLA transpose is needed afterwards.
# ---------------------------------------------------------------------------
def _proj_split_kernel(x_ref, w_ref, b_ref, o_ref):
    # x_ref: (TL, Din)   w_ref: (G, hd, Din)   b_ref: (G, 1, hd)   o_ref: (G, TL, hd)
    x = x_ref[...]
    n_heads_in_block = o_ref.shape[0]
    for g in range(n_heads_in_block):
        y = jax.lax.dot_general(
            x, w_ref[g],
            dimension_numbers=(((1,), (1,)), ((), ())),   # contract on the 'in' axis
            preferred_element_type=jnp.float32)           # (TL, hd), f32 accumulate
        o_ref[g] = (y + b_ref[g].astype(jnp.float32)).astype(o_ref.dtype)


def head_split_projection(x, w, b, n_head, *, tl=256, w_budget_bytes=16 << 20):
    """nn.Linear (W is (out, in)) followed by head split, in one kernel.

    x: (B, L, Din); w: (n_head*hd, Din); b: (n_head*hd,) -> out: (B, n_head, L, hd).
    """
    B, L, Din = x.shape
    Dout = w.shape[0]
    hd = Dout // n_head
    esize = jnp.dtype(x.dtype).itemsize
    TL = min(tl, L)

    # Heads per weight block: whole weight resident if it fits the budget,
    # else the largest divisor of n_head that does (out-feature axis is outermost).
    G = 1
    for cand in range(n_head, 0, -1):
        if n_head % cand == 0 and cand * hd * Din * esize <= w_budget_bytes:
            G = cand
            break

    w3 = w.reshape(n_head, hd, Din)       # free reshape (per-head weight rows)
    b3 = b.reshape(n_head, 1, hd)
    grid = (n_head // G, B, pl.cdiv(L, TL))

    vmem_need = 2 * esize * (TL * Din + G * hd * Din + G * hd + G * TL * hd)
    return pl.pallas_call(
        _proj_split_kernel,
        out_shape=jax.ShapeDtypeStruct((B, n_head, L, hd), x.dtype),
        grid_spec=pltpu.PrefetchScalarGridSpec(
            num_scalar_prefetch=0,
            grid=grid,
            in_specs=[
                pl.BlockSpec((pl.Squeezed(), TL, Din),
                             lambda hg, b_, lt: (b_, lt, 0)),
                pl.BlockSpec((G, hd, Din), lambda hg, b_, lt: (hg, 0, 0)),
                pl.BlockSpec((G, 1, hd), lambda hg, b_, lt: (hg, 0, 0)),
            ],
            out_specs=pl.BlockSpec((pl.Squeezed(), G, TL, hd),
                                   lambda hg, b_, lt: (b_, hg, lt, 0)),
        ),
        compiler_params=pltpu.CompilerParams(
            dimension_semantics=("parallel", "parallel", "parallel"),
            vmem_limit_bytes=_vmem_limit(vmem_need)),
        cost_estimate=pl.CostEstimate(
            flops=2 * B * L * Din * Dout,
            transcendentals=0,
            bytes_accessed=esize * (B * L * Din * (n_head // G)
                                    + Dout * Din + Dout + B * L * Dout)),
    )(x, w3, b3)


# ---------------------------------------------------------------------------
# Flash attention on the (B, H, L, hd) layout, grid (B, H, q_tiles, kv_tiles).
# Q is assumed pre-scaled by 1/sqrt(hd) (folded into w_q).
# Static head offsets let Q/K/V live inside one fused projection output.
# ---------------------------------------------------------------------------
def _flash_kernel(q_ref, k_ref, v_ref, o_ref, m_sc, l_sc, acc_sc, *,
                  kv_len, block_k, mask_ragged):
    ki = pl.program_id(3)

    @pl.when(ki == 0)
    def _():
        m_sc[...] = jnp.full_like(m_sc, -1e30)
        l_sc[...] = jnp.zeros_like(l_sc)
        acc_sc[...] = jnp.zeros_like(acc_sc)

    # Native-dtype operands straight into the MXU; f32 accumulation only.
    s = jax.lax.dot_general(
        q_ref[...], k_ref[...],
        dimension_numbers=(((1,), (1,)), ((), ())),
        preferred_element_type=jnp.float32)               # (TQ, TK)

    if mask_ragged:   # trace-time: only emitted when Lk % TK != 0
        col = ki * block_k + jax.lax.broadcasted_iota(jnp.int32, s.shape, 1)
        s = jnp.where(col < kv_len, s, -1e30)

    m_prev = m_sc[...]
    m_new = jnp.maximum(m_prev, s.max(axis=-1, keepdims=True))
    alpha = jnp.exp(m_prev - m_new)
    p = jnp.exp(s - m_new)
    l_sc[...] = alpha * l_sc[...] + p.sum(axis=-1, keepdims=True)
    acc_sc[...] = alpha * acc_sc[...] + jax.lax.dot_general(
        p.astype(v_ref.dtype), v_ref[...],
        dimension_numbers=(((1,), (0,)), ((), ())),
        preferred_element_type=jnp.float32)
    m_sc[...] = m_new

    @pl.when(ki == pl.num_programs(3) - 1)
    def _():
        o_ref[...] = (acc_sc[...] * pl.reciprocal(l_sc[...], approx=True)
                      ).astype(o_ref.dtype)


def flash_attention(q, k, v, *, n_head, q_head_offset=0, k_head_offset=0,
                    v_head_offset=0, tq=128, tk=256):
    # q: (B, Hq_total, Lq, hd)   k, v: (B, Hkv_total, Lk, hd)  (may alias q)
    B, _, Lq, hd = q.shape
    Lk = k.shape[2]
    TQ = min(tq, Lq)
    TK = min(tk, Lk)
    grid = (B, n_head, pl.cdiv(Lq, TQ), pl.cdiv(Lk, TK))
    mask_ragged = (Lk % TK) != 0
    kernel = functools.partial(_flash_kernel, kv_len=Lk, block_k=TK,
                               mask_ragged=mask_ragged)
    esize = jnp.dtype(q.dtype).itemsize
    qo, ko, vo = q_head_offset, k_head_offset, v_head_offset

    vmem_need = (2 * esize * (2 * TQ * hd + 2 * TK * hd)
                 + 4 * (2 * TQ + TQ * hd))
    return pl.pallas_call(
        kernel,
        out_shape=jax.ShapeDtypeStruct((B, n_head, Lq, hd), q.dtype),
        grid_spec=pltpu.PrefetchScalarGridSpec(
            num_scalar_prefetch=0,
            grid=grid,
            in_specs=[
                pl.BlockSpec((pl.Squeezed(), pl.Squeezed(), TQ, hd),
                             lambda b, h, qi, ki: (b, h + qo, qi, 0)),
                pl.BlockSpec((pl.Squeezed(), pl.Squeezed(), TK, hd),
                             lambda b, h, qi, ki: (b, h + ko, ki, 0)),
                pl.BlockSpec((pl.Squeezed(), pl.Squeezed(), TK, hd),
                             lambda b, h, qi, ki: (b, h + vo, ki, 0)),
            ],
            out_specs=pl.BlockSpec((pl.Squeezed(), pl.Squeezed(), TQ, hd),
                                   lambda b, h, qi, ki: (b, h, qi, 0)),
            scratch_shapes=[
                pltpu.VMEM((TQ, 1), jnp.float32),     # running max m
                pltpu.VMEM((TQ, 1), jnp.float32),     # running denom l
                pltpu.VMEM((TQ, hd), jnp.float32),    # f32 accumulator
            ],
        ),
        compiler_params=pltpu.CompilerParams(
            dimension_semantics=("parallel", "parallel", "parallel", "arbitrary"),
            vmem_limit_bytes=_vmem_limit(vmem_need)),
        cost_estimate=pl.CostEstimate(
            flops=4 * B * n_head * Lq * Lk * hd,
            transcendentals=B * n_head * Lq * Lk,
            bytes_accessed=esize * B * n_head * (2 * Lq * hd
                                                 + 2 * pl.cdiv(Lq, TQ) * Lk * hd)),
    )(q, k, v)


# ---------------------------------------------------------------------------
# Head merge + output projection, directly from the (B, H, Lq, hd) context:
#   out[b, l, :] = sum_h ctx[b, h, l, :] @ W_out[:, h*hd:(h+1)*hd].T + b_out
# Lane-dense (TL, TN) output tiles; no XLA transpose of the context needed.
# ---------------------------------------------------------------------------
def _merge_proj_kernel(ctx_ref, w_ref, b_ref, o_ref):
    # ctx_ref: (H, TL, hd)   w_ref: (H, TN, hd)   b_ref: (1, TN)   o_ref: (TL, TN)
    n_head = ctx_ref.shape[0]
    dims = (((1,), (1,)), ((), ()))
    y = jax.lax.dot_general(ctx_ref[0], w_ref[0], dims,
                            preferred_element_type=jnp.float32)
    for h in range(1, n_head):
        y = y + jax.lax.dot_general(ctx_ref[h], w_ref[h], dims,
                                    preferred_element_type=jnp.float32)
    o_ref[...] = (y + b_ref[...].astype(jnp.float32)).astype(o_ref.dtype)


def head_merge_projection(ctx, w, b, *, tl=256, tn=512):
    # ctx: (B, H, Lq, hd)   w: (Dout, H*hd) PyTorch layout   -> out: (B, Lq, Dout)
    B, H, Lq, hd = ctx.shape
    Dout = w.shape[0]
    Din = H * hd
    TL = min(tl, Lq)
    TN = min(tn, Dout)
    esize = jnp.dtype(ctx.dtype).itemsize

    # One-time small weight relayout outside the kernel: (Dout, H, hd) -> (H, Dout, hd)
    w_h = jnp.transpose(w.reshape(Dout, H, hd), (1, 0, 2))
    b2 = b.reshape(1, Dout)
    grid = (pl.cdiv(Dout, TN), B, pl.cdiv(Lq, TL))

    vmem_need = 2 * esize * (H * TL * hd + H * TN * hd + TN + TL * TN)
    return pl.pallas_call(
        _merge_proj_kernel,
        out_shape=jax.ShapeDtypeStruct((B, Lq, Dout), ctx.dtype),
        grid_spec=pltpu.PrefetchScalarGridSpec(
            num_scalar_prefetch=0,
            grid=grid,
            in_specs=[
                pl.BlockSpec((pl.Squeezed(), H, TL, hd),
                             lambda nt, b_, lt: (b_, 0, lt, 0)),
                pl.BlockSpec((H, TN, hd), lambda nt, b_, lt: (0, nt, 0)),
                pl.BlockSpec((1, TN), lambda nt, b_, lt: (0, nt)),
            ],
            out_specs=pl.BlockSpec((pl.Squeezed(), TL, TN),
                                   lambda nt, b_, lt: (b_, lt, nt)),
        ),
        compiler_params=pltpu.CompilerParams(
            dimension_semantics=("parallel", "parallel", "parallel"),
            vmem_limit_bytes=_vmem_limit(vmem_need)),
        cost_estimate=pl.CostEstimate(
            flops=2 * B * Lq * Din * Dout,
            transcendentals=0,
            bytes_accessed=esize * (B * Lq * Din * pl.cdiv(Dout, TN)
                                    + Dout * Din + Dout + B * Lq * Dout)),
    )(ctx, w_h, b2)


# ---------------------------------------------------------------------------
# Full module forward (mask=None path)
# ---------------------------------------------------------------------------
def multi_head_attention(q, k, v, params, n_head):
    wq, bq, wk, bk, wv, bv, wo, bo = params
    d_model = q.shape[-1]
    hd = d_model // n_head
    scale = 1.0 / float(hd) ** 0.5

    # Fold the softmax 1/sqrt(hd) into the Q projection (zero in-kernel cost).
    wq_s = (wq * scale).astype(wq.dtype)
    bq_s = (bq * scale).astype(bq.dtype)

    if (q is k) and (k is v):
        # Self-attention: one fused QKV projection, single read of the input.
        w_all = jnp.concatenate([wq_s, wk, wv], axis=0)
        b_all = jnp.concatenate([bq_s, bk, bv], axis=0)
        qkv = head_split_projection(q, w_all, b_all, 3 * n_head)
        ctx = flash_attention(qkv, qkv, qkv, n_head=n_head,
                              q_head_offset=0, k_head_offset=n_head,
                              v_head_offset=2 * n_head)
    elif k is v:
        # Cross-attention with shared key/value source: fuse the K and V projections.
        w_kv = jnp.concatenate([wk, wv], axis=0)
        b_kv = jnp.concatenate([bk, bv], axis=0)
        Qh = head_split_projection(q, wq_s, bq_s, n_head)
        KVh = head_split_projection(k, w_kv, b_kv, 2 * n_head)
        ctx = flash_attention(Qh, KVh, KVh, n_head=n_head,
                              k_head_offset=0, v_head_offset=n_head)
    else:
        Qh = head_split_projection(q, wq_s, bq_s, n_head)
        Kh = head_split_projection(k, wk, bk, n_head)
        Vh = head_split_projection(v, wv, bv, n_head)
        ctx = flash_attention(Qh, Kh, Vh, n_head=n_head)

    return head_merge_projection(ctx, wo, bo)


if __name__ == "__main__":
    batch, q_len, kv_len, d_model, n_head = 2, 8, 16, 32, 4

    key = jax.random.PRNGKey(0)
    ks = jax.random.split(key, 11)
    q = jax.random.normal(ks[0], (batch, q_len, d_model), dtype=jnp.float32)
    k = jax.random.normal(ks[1], (batch, kv_len, d_model), dtype=jnp.float32)
    v = jax.random.normal(ks[2], (batch, kv_len, d_model), dtype=jnp.float32)

    def init_linear(kw, kb, d_out, d_in, scale=0.05):
        w = jax.random.normal(kw, (d_out, d_in), dtype=jnp.float32) * scale
        b = jax.random.normal(kb, (d_out,), dtype=jnp.float32) * scale
        return w, b

    wq, bq = init_linear(ks[3], ks[4], d_model, d_model)
    wk, bk = init_linear(ks[5], ks[6], d_model, d_model)
    wv, bv = init_linear(ks[7], ks[8], d_model, d_model)
    wo, bo = init_linear(ks[9], ks[10], d_model, d_model)
    params = (wq, bq, wk, bk, wv, bv, wo, bo)

    out = multi_head_attention(q, k, v, params, n_head)
    out = jax.block_until_ready(out)

    # Plain-JAX reference mirroring the PyTorch forward (mask=None path).
    hd = d_model // n_head
    Qr = (q @ wq.T + bq).reshape(batch, q_len, n_head, hd).transpose(0, 2, 1, 3)
    Kr = (k @ wk.T + bk).reshape(batch, kv_len, n_head, hd).transpose(0, 2, 1, 3)
    Vr = (v @ wv.T + bv).reshape(batch, kv_len, n_head, hd).transpose(0, 2, 1, 3)
    s = jnp.einsum('bhqd,bhkd->bhqk', Qr, Kr) / (hd ** 0.5)
    attn = jax.nn.softmax(s, axis=-1)
    ctx = jnp.einsum('bhqk,bhkd->bhqd', attn, Vr).transpose(0, 2, 1, 3)
    ref = ctx.reshape(batch, q_len, d_model) @ wo.T + bo

    assert out.shape == (batch, q_len, d_model)
    assert jnp.allclose(out, ref, atol=2e-3, rtol=2e-3), \
        float(jnp.max(jnp.abs(out - ref)))

    print("KERNEL_OK")
</pallas_src>

<mosaic_0001>
module attributes {stable_mosaic.version = 11 : i64} {
  func.func @_proj_split_kernel(%arg0: i32, %arg1: i32, %arg2: i32, %arg3: memref<1x8x32xf32, #tpu.memory_space<vmem>>, %arg4: memref<4x8x32xf32, #tpu.memory_space<vmem>>, %arg5: memref<4x1x8xf32, #tpu.memory_space<vmem>>, %arg6: memref<1x4x8x8xf32, #tpu.memory_space<vmem>>) attributes {dimension_semantics = [#tpu.dimension_semantics<parallel>, #tpu.dimension_semantics<parallel>, #tpu.dimension_semantics<parallel>], iteration_bounds = array<i64: 1, 2, 1>, scalar_prefetch = 0 : i64, scratch_operands = 0 : i64, tpu.core_type = #tpu.core_type<tc>, window_params = [{transform_indices = @transform_0, window_bounds = array<i64: 1, 8, 32>}, {transform_indices = @transform_1, window_bounds = array<i64: 4, 8, 32>}, {transform_indices = @transform_2, window_bounds = array<i64: 4, 1, 8>}, {transform_indices = @transform_3, window_bounds = array<i64: 1, 4, 8, 8>}]} {
    %c0 = arith.constant 0 : index
    %c0_0 = arith.constant 0 : index
    %c0_1 = arith.constant 0 : index
    %0 = vector.load %arg3[%c0, %c0_0, %c0_1] : memref<1x8x32xf32, #tpu.memory_space<vmem>>, vector<1x8x32xf32>
    %1 = vector.shape_cast %0 : vector<1x8x32xf32> to vector<8x32xf32>
    %c0_2 = arith.constant 0 : index
    %c0_3 = arith.constant 0 : index
    %c0_4 = arith.constant 0 : index
    %2 = vector.load %arg4[%c0_2, %c0_3, %c0_4] : memref<4x8x32xf32, #tpu.memory_space<vmem>>, vector<1x8x32xf32>
    %3 = vector.shape_cast %2 : vector<1x8x32xf32> to vector<8x32xf32>
    %cst = arith.constant dense<0.000000e+00> : vector<8x8xf32>
    %4 = tpu.matmul %1, %3, %cst {dimension_numbers = #tpu.dot_dimension_numbers<[1], [1], [0], [0], [0, 0, 1, 0], [], []>} : vector<8x32xf32>, vector<8x32xf32>, vector<8x8xf32> -> vector<8x8xf32>
    %c0_5 = arith.constant 0 : index
    %c0_6 = arith.constant 0 : index
    %c0_7 = arith.constant 0 : index
    %5 = vector.load %arg5[%c0_5, %c0_6, %c0_7] : memref<4x1x8xf32, #tpu.memory_space<vmem>>, vector<1x1x8xf32>
    %6 = vector.shape_cast %5 : vector<1x1x8xf32> to vector<1x8xf32>
    %7 = vector.broadcast %6 : vector<1x8xf32> to vector<8x8xf32>
    %8 = arith.addf %4, %7 : vector<8x8xf32>
    %c0_8 = arith.constant 0 : index
    %c0_9 = arith.constant 0 : index
    %c0_10 = arith.constant 0 : index
    %c0_11 = arith.constant 0 : index
    %9 = vector.load %arg6[%c0_8, %c0_9, %c0_10, %c0_11] : memref<1x4x8x8xf32, #tpu.memory_space<vmem>>, vector<1x1x8x8xf32>
    %10 = vector.shape_cast %9 : vector<1x1x8x8xf32> to vector<8x8xf32>
    %11 = vector.shape_cast %8 : vector<8x8xf32> to vector<1x1x8x8xf32>
    tpu.vector_store %arg6[%c0_8, %c0_9, %c0_10, %c0_11], %11 {strides = array<i32>} : memref<1x4x8x8xf32, #tpu.memory_space<vmem>>, vector<1x1x8x8xf32>,
    %c1 = arith.constant 1 : index
    %c0_12 = arith.constant 0 : index
    %c0_13 = arith.constant 0 : index
    %12 = vector.load %arg4[%c1, %c0_12, %c0_13] : memref<4x8x32xf32, #tpu.memory_space<vmem>>, vector<1x8x32xf32>
    %13 = vector.shape_cast %12 : vector<1x8x32xf32> to vector<8x32xf32>
    %cst_14 = arith.constant dense<0.000000e+00> : vector<8x8xf32>
    %14 = tpu.matmul %1, %13, %cst_14 {dimension_numbers = #tpu.dot_dimension_numbers<[1], [1], [0], [0], [0, 0, 1, 0], [], []>} : vector<8x32xf32>, vector<8x32xf32>, vector<8x8xf32> -> vector<8x8xf32>
    %c1_15 = arith.constant 1 : index
    %c0_16 = arith.constant 0 : index
    %c0_17 = arith.constant 0 : index
    %15 = vector.load %arg5[%c1_15, %c0_16, %c0_17] : memref<4x1x8xf32, #tpu.memory_space<vmem>>, vector<1x1x8xf32>
    %16 = vector.shape_cast %15 : vector<1x1x8xf32> to vector<1x8xf32>
    %17 = vector.broadcast %16 : vector<1x8xf32> to vector<8x8xf32>
    %18 = arith.addf %14, %17 : vector<8x8xf32>
    %c0_18 = arith.constant 0 : index
    %c1_19 = arith.constant 1 : index
    %c0_20 = arith.constant 0 : index
    %c0_21 = arith.constant 0 : index
    %19 = vector.load %arg6[%c0_18, %c1_19, %c0_20, %c0_21] : memref<1x4x8x8xf32, #tpu.memory_space<vmem>>, vector<1x1x8x8xf32>
    %20 = vector.shape_cast %19 : vector<1x1x8x8xf32> to vector<8x8xf32>
    %21 = vector.shape_cast %18 : vector<8x8xf32> to vector<1x1x8x8xf32>
    tpu.vector_store %arg6[%c0_18, %c1_19, %c0_20, %c0_21], %21 {strides = array<i32>} : memref<1x4x8x8xf32, #tpu.memory_space<vmem>>, vector<1x1x8x8xf32>,
    %c2 = arith.constant 2 : index
    %c0_22 = arith.constant 0 : index
    %c0_23 = arith.constant 0 : index
    %22 = vector.load %arg4[%c2, %c0_22, %c0_23] : memref<4x8x32xf32, #tpu.memory_space<vmem>>, vector<1x8x32xf32>
    %23 = vector.shape_cast %22 : vector<1x8x32xf32> to vector<8x32xf32>
    %cst_24 = arith.constant dense<0.000000e+00> : vector<8x8xf32>
    %24 = tpu.matmul %1, %23, %cst_24 {dimension_numbers = #tpu.dot_dimension_numbers<[1], [1], [0], [0], [0, 0, 1, 0], [], []>} : vector<8x32xf32>, vector<8x32xf32>, vector<8x8xf32> -> vector<8x8xf32>
    %c2_25 = arith.constant 2 : index
    %c0_26 = arith.constant 0 : index
    %c0_27 = arith.constant 0 : index
    %25 = vector.load %arg5[%c2_25, %c0_26, %c0_27] : memref<4x1x8xf32, #tpu.memory_space<vmem>>, vector<1x1x8xf32>
    %26 = vector.shape_cast %25 : vector<1x1x8xf32> to vector<1x8xf32>
    %27 = vector.broadcast %26 : vector<1x8xf32> to vector<8x8xf32>
    %28 = arith.addf %24, %27 : vector<8x8xf32>
    %c0_28 = arith.constant 0 : index
    %c2_29 = arith.constant 2 : index
    %c0_30 = arith.constant 0 : index
    %c0_31 = arith.constant 0 : index
    %29 = vector.load %arg6[%c0_28, %c2_29, %c0_30, %c0_31] : memref<1x4x8x8xf32, #tpu.memory_space<vmem>>, vector<1x1x8x8xf32>
    %30 = vector.shape_cast %29 : vector<1x1x8x8xf32> to vector<8x8xf32>
    %31 = vector.shape_cast %28 : vector<8x8xf32> to vector<1x1x8x8xf32>
    tpu.vector_store %arg6[%c0_28, %c2_29, %c0_30, %c0_31], %31 {strides = array<i32>} : memref<1x4x8x8xf32, #tpu.memory_space<vmem>>, vector<1x1x8x8xf32>,
    %c3 = arith.constant 3 : index
    %c0_32 = arith.constant 0 : index
    %c0_33 = arith.constant 0 : index
    %32 = vector.load %arg4[%c3, %c0_32, %c0_33] : memref<4x8x32xf32, #tpu.memory_space<vmem>>, vector<1x8x32xf32>
    %33 = vector.shape_cast %32 : vector<1x8x32xf32> to vector<8x32xf32>
    %cst_34 = arith.constant dense<0.000000e+00> : vector<8x8xf32>
    %34 = tpu.matmul %1, %33, %cst_34 {dimension_numbers = #tpu.dot_dimension_numbers<[1], [1], [0], [0], [0, 0, 1, 0], [], []>} : vector<8x32xf32>, vector<8x32xf32>, vector<8x8xf32> -> vector<8x8xf32>
    %c3_35 = arith.constant 3 : index
    %c0_36 = arith.constant 0 : index
    %c0_37 = arith.constant 0 : index
    %35 = vector.load %arg5[%c3_35, %c0_36, %c0_37] : memref<4x1x8xf32, #tpu.memory_space<vmem>>, vector<1x1x8xf32>
    %36 = vector.shape_cast %35 : vector<1x1x8xf32> to vector<1x8xf32>
    %37 = vector.broadcast %36 : vector<1x8xf32> to vector<8x8xf32>
    %38 = arith.addf %34, %37 : vector<8x8xf32>
    %c0_38 = arith.constant 0 : index
    %c3_39 = arith.constant 3 : index
    %c0_40 = arith.constant 0 : index
    %c0_41 = arith.constant 0 : index
    %39 = vector.load %arg6[%c0_38, %c3_39, %c0_40, %c0_41] : memref<1x4x8x8xf32, #tpu.memory_space<vmem>>, vector<1x1x8x8xf32>
    %40 = vector.shape_cast %39 : vector<1x1x8x8xf32> to vector<8x8xf32>
    %41 = vector.shape_cast %38 : vector<8x8xf32> to vector<1x1x8x8xf32>
    tpu.vector_store %arg6[%c0_38, %c3_39, %c0_40, %c0_41], %41 {strides = array<i32>} : memref<1x4x8x8xf32, #tpu.memory_space<vmem>>, vector<1x1x8x8xf32>,
    return
  }
  func.func @transform_0(%arg0: i32, %arg1: i32, %arg2: i32) -> (i32, i32, i32) {
    %c0_i32 = arith.constant 0 : i32
    %c0_i32_0 = arith.constant 0 : i32
    return %arg1, %arg2, %c0_i32 : i32, i32, i32
  }
  func.func @transform_1(%arg0: i32, %arg1: i32, %arg2: i32) -> (i32, i32, i32) {
    %c0_i32 = arith.constant 0 : i32
    %c0_i32_0 = arith.constant 0 : i32
    %c0_i32_1 = arith.constant 0 : i32
    return %arg0, %c0_i32, %c0_i32_0 : i32, i32, i32
  }
  func.func @transform_2(%arg0: i32, %arg1: i32, %arg2: i32) -> (i32, i32, i32) {
    %c0_i32 = arith.constant 0 : i32
    %c0_i32_0 = arith.constant 0 : i32
    %c0_i32_1 = arith.constant 0 : i32
    return %arg0, %c0_i32, %c0_i32_0 : i32, i32, i32
  }
  func.func @transform_3(%arg0: i32, %arg1: i32, %arg2: i32) -> (i32, i32, i32, i32) {
    %c0_i32 = arith.constant 0 : i32
    %c0_i32_0 = arith.constant 0 : i32
    return %arg1, %arg0, %arg2, %c0_i32 : i32, i32, i32, i32
  }
}

</mosaic_0001>

<bundles_post_ra>
// kernel: tpu_custom_call.1
= control target key start
LH: loop header
LB: loop body
LE: loop exit
PB: predicated region body
PF: predicated region fallthrough
CT: control target
= control target key end

     0   :  { %8 = vsyncpa [#allocation3], 0  ;;  %s1288_s0 = inlined_call_operand.hbm [shape: f32[2,8,32], index: 0, kind: input, shape index: {}]   ;;  %s1289_s1 = inlined_call_operand.hbm [shape: f32[4,8,32], index: 1, kind: input, shape index: {}]   ;;  %s1290_s2 = inlined_call_operand.hbm [shape: f32[4,1,8], index: 2, kind: input, shape index: {}]   ;;  %s1291_s3 = inlined_call_operand.hbm [shape: f32[2,4,8,8], index: 3, kind: output, shape index: {}]  }
   0x1   :  { %10 = vsyncpa [#allocation3 + $0x1], 0 }
   0x2   :  { %11 = vsyncpa [#allocation6], 0 }
   0x3   :  { %12 = vsyncpa [#allocation4], 0 }
   0x4   :  { %14 = vsyncpa [#allocation4 + $0x1], 0  ;;  %s1083_s12 = smov 0   ;;  %s1085_s13 = smov 0  }
   0x5   :  { %s1087_s14 = smov 0   ;;  %s1089_s15 = smov 0  }
   0x6   :  { %s1091_s16 = smov 0   ;;  %s1093_s17 = smov 0  }
   0x7 LB: > { %s732_s18 = sadd.s32 4294967295, %s1049_s17   ;;  %s733_s19 = sadd.s32 4294967294, %s1049_s17   ;;  %s1049_s17 = sphi %s1093_s17, %s20_s17   ;;  %s1045_s16 = sphi %s1091_s16, %s1311_s16   ;;  %s1041_s15 = sphi %s1089_s15, %s1310_s15   ;;  %s1037_s14 = sphi %s1087_s14, %s1309_s14   ;;  %s1033_s13 = sphi %s1085_s13, %s1308_s13   ;;  %s1029_s12 = sphi %s1083_s12, %s1307_s12  }
   0x8   : > { %p61_p0 = scmp.ne.s32.totalorder %s1033_s13, %s1029_s12  ;;  %p1117_p1 = scmp.eq.s32.totalorder %s732_s18, 0 }
   0x9   : > { %p1121_p2 = scmp.eq.s32.totalorder %s732_s18, 1  ;;  %p147_p3 = scmp.eq.s32.totalorder %s733_s19, 1 }
   0xa   : > { %s1295_s20 = scalar_select %p1117_p1, 1, 0 }
   0xb   : > { %p1127_p4 = por %p1117_p1, %p61_p0  ;;  %p734_p5 = scmp.ge.s32.totalorder %s1049_s17, 1 }
   0xc   : > { %p1132_p6 = por %p147_p3, %p61_p0  ;;  %p154_p7 = scmp.lt.s32.totalorder %s1049_s17, 3 }
   0xd   : > { %s1297_s22 = scalar_select %p1127_p4, 1, 0 }
   0xe   : > { %s1298_s23 = scalar_select %p1132_p6, 1, 0 }
   0xf   : > { %p1137_p8 = pnand %p734_p5, %p154_p7  ;;  %s1051_s25 = smov [#allocation5]  }
  0x10   : > { %s169_s26 = sshll.u32 %s1051_s25, 4  ;;  %s1052_s28 = smov [#allocation7]   ;;  %s170_s26 = int_to_ptr.vmem [resolvable:$true] %s169_s26 }
  0x11   : > { %p806_p9 = pneg %p1137_p8  ;;  %s185_s29 = sshll.u32 %s1052_s28, 4  ;;  %s186_s29 = int_to_ptr.vmem [resolvable:$true] %s185_s29 }
  0x12   : > { %s896_s30 = scalar_lea.vmem %s170_s26, 512  ;;  %p904_p5 = scmp.lt.s32.totalorder %s170_s26, %s170_s26 }
  0x13   : > { %p1146_p11 = pnand %p806_p9, %p1117_p1  ;;  %p897_p13 = scmp.ne.s32.totalorder %s170_s26, %s896_s30 }
  0x14   : > { %p905_p7 = scmp.lt.s32.totalorder %s896_s30, %s896_s30 }
  0x15   : > { %p887_p12 = pneg %p1146_p11 }
  0x16   : > { %p906_p10 = por %p905_p7, %p904_p5 }
  0x17   : > { %p899_p0 = pnand %p897_p13, %p887_p12 }
  0x19   : > { %p900_p3 = pneg %p899_p0 }
  0x1b   : > { %p907_p9 = pnand %p906_p10, %p900_p3 }
  0x1d   : > { %910 = shalt.err (!%p907_p9)
}
  0x1e   : > { %s1053_s4 = smov 128   ;;  %s1054_s5 = smov 8  }
  0x1f   : > { %809 = dma.hbm_to_vmem [thread:$0]  (!%p1146_p11), %s1289_s1, 512, %s170_s26, [#allocation6], %s1053_s4, %s1053_s4, %s1054_s5  }
  0x20   : > { %s922_s8 = scalar_lea.vmem %s186_s29, 64  ;;  %p930_p1 = scmp.lt.s32.totalorder %s186_s29, %s186_s29 }
  0x21   : > { %p923_p6 = scmp.ne.s32.totalorder %s186_s29, %s922_s8  ;;  %p931_p4 = scmp.lt.s32.totalorder %s922_s8, %s922_s8 }
  0x23   : > { %p925_p13 = pnand %p923_p6, %p887_p12  ;;  %p932_p5 = por %p931_p4, %p930_p1 }
  0x25   : > { %p926_p0 = pneg %p925_p13 }
  0x27   : > { %p933_p10 = pnand %p932_p5, %p926_p0 }
  0x29   : > { %936 = shalt.err (!%p933_p10)
}
  0x2a   : > { %s1055_s9 = smov 16   ;;  %s1056_s10 = smov 1  }
  0x2b   : > { %812 = dma.hbm_to_vmem [thread:$0]  (!%p1146_p11), %s1290_s2, 64, %s186_s29, [#allocation6], %s1055_s9, %s1055_s9, %s1056_s10  }
  0x2c   : > { %s35_s19 = sadd.s32 1, %s1045_s16  ;;  %s48_s25 = sadd.s32 1, %s1037_s14 }
  0x2d   : > { %p37_p1 = scmp.ge.s32.totalorder %s35_s19, 2  ;;  %p55_p4 = scmp.ne.s32.totalorder %s1037_s14, %s1033_s13 }
  0x2e   : > { %p56_p6 = scmp.eq.s32.totalorder %s1049_s17, 0  ;;  %p823_p12 = scmp.lt.s32.totalorder %s1049_s17, 2 }
  0x2f   : > { %s1313_s19 = smov (%p37_p1, %s35_s19), 0  ;;  %p1178_p7 = por %p1121_p2, %p55_p4 }
  0x30   : > { %p57_p3 = por %p56_p6, %p55_p4  ;;  %s43_s27 = ssub.s32 %s1045_s16, %s1313_s19 }
  0x31   : > { %s199_s28 = sand.u32 1, %s1037_s14   ;;  %p46_p9 = scmp.eq.s32.totalorder %s43_s27, 0 }
  0x32   : > { %s738_s29 = sshll.u32 %s199_s28, 3  ;;  %s739_s30 = sshll.u32 %s1045_s16, 7 }
  0x33   : > { %s1187_s4 = scalar_select %p46_p9, %s1037_s14, %s48_s25  }
  0x34   : > { %s209_s7 = scalar_lea.hbm %s1288_s0, %s739_s30  ;;  %s203_s8 = scalar_lea.vmem [#allocation2], %s738_s29 }
  0x35   : > { %s211_s9 = sshll.u32 %s203_s8, 4  ;;  %p1194_p11 = pnand %p823_p12, %p57_p3  ;;  %s212_s9 = int_to_ptr.vmem [resolvable:$true] %s211_s9 }
  0x36   : > { %s200_s10 = scalar_lea.sflag [#allocation3], %s199_s28  ;;  %s950_s11 = scalar_lea.vmem %s212_s9, 128 }
  0x37   : > { %p939_p2 = pneg %p1194_p11  ;;  %p951_p13 = scmp.ne.s32.totalorder %s212_s9, %s950_s11 }
  0x38   : > { %s1057_s18 = smov [#allocation2]  }
  0x39   : > { %p953_p0 = pnand %p951_p13, %p939_p2  ;;  %s955_s25 = sshll.u32 %s1057_s18, 4  ;;  %s956_s25 = int_to_ptr.vmem [resolvable:$false] %s955_s25 }
  0x3a   : > { %s957_s27 = scalar_lea.vmem %s956_s25, 256  ;;  %p958_p10 = scmp.lt.s32.totalorder %s212_s9, %s956_s25 }
  0x3b   : > { %p954_p5 = pneg %p953_p0  ;;  %p959_p1 = scmp.lt.s32.totalorder %s957_s27, %s950_s11 }
  0x3d   : > { %p960_p4 = por %p959_p1, %p958_p10 }
  0x3f   : > { %p961_p6 = pnand %p960_p4, %p954_p5 }
  0x41   : > { %964 = shalt.err (!%p961_p6)
}
  0x42   : > { %816 = dma.hbm_to_vmem [thread:$0]  (!%p1194_p11), %s209_s7, 128, %s212_s9, %s200_s10  }
  0x43   : > { %220 = sbr.rel (%p1137_p8) target bundleno = 295 (0x127), region = 32  ;;  %s1205_s28 = sand.u32 (!%p1137_p8), 1, %s1033_s13  }
  0x44   : > { %s741_s29 = sshll.u32 (!%p1137_p8), %s1205_s28, 3  ;;  %s223_s30 = scalar_lea.sflag (!%p1137_p8), [#allocation3], %s1205_s28 }
  0x45   : > { %s226_s5 = scalar_lea.vmem (!%p1137_p8), [#allocation2], %s741_s29  ;;  %p1303_p12 = scmp.ne.s32.totalorder (!%p1137_p8), %s1297_s22, 0 }
  0x48   : > { %1016 = dma.done.wait (%p1303_p12), %s223_s30, 128  }
  0x49   : > { %1018 = vsyncadd (%p1303_p12), %s223_s30, 4294967168  ;;  %p1304_p3 = scmp.ne.s32.totalorder %s1295_s20, 0 }
  0x4b   : > { %1020 = dma.done.wait (%p1304_p3), [#allocation6], 576  }
  0x4c   : > { %1022 = vsyncadd (%p1304_p3), [#allocation6], 4294966720  ;;  %v1058_v0 = vmov 0.0   ;;  %vm1059_vm0 = vmmov 0   ;;  %vm269_vm1 = vcmask 261120   ;;  %v261_v1 = vld [vmem:[#allocation5] sm:$0xff] }
  0x4d   : > { %774 = vmatprep.subr.mxu0 %v1058_v0  ;;  %779 = vmatprep.subr.mxu1 %v1058_v0  ;;  %v349_v2 = vld [vmem:[#allocation5 + $0x8] sm:$0xff]  ;;  %v260_v3 = vld [vmem:[%s226_s5] sm:$0xff]  ;;  %s744_s20 = sshll.u32 %s1205_s28, 5  ;;  %v745_v6 = vld [vmem:[#allocation7] ss:$0 sm:$0xff]  ;;  %vm346_vm2 = vcmask 64512  }
  0x4e   : > { %776 = vmatprep.mubr.msk.f32.mxu0 %vm1059_vm0, %v1058_v0  ;;  %781 = vmatprep.mubr.msk.f32.mxu1 %vm1059_vm0, %v1058_v0  ;;  %v434_v4 = vld [vmem:[#allocation5 + $0x10] sm:$0xff]  ;;  %v519_v5 = vld [vmem:[#allocation5 + $0x18] sm:$0xff]  ;;  %v748_v7 = vld [vmem:[#allocation7 + $0x1] ss:$0 sm:$0xff]  ;;  %s256_s22 = scalar_lea.vmem [#allocation8], %s744_s20  ;;  %s765_s6 = sshll.u32 %s1041_s15, 9 }
  0x4f   : > { %775 = vmatpush3.xpose.msk.msra.mxu0 %vm269_vm1, %v261_v1  ;;  %780 = vmatpush3.xpose.msk.msra.mxu1 %vm269_vm1, %v349_v2  ;;  %s620_s24 = sshll.u32 %s256_s22, 4  ;;  %v752_v14 = vld [vmem:[#allocation7 + $0x2] ss:$0 sm:$0xff]  ;;  %v756_v15 = vld [vmem:[#allocation7 + $0x3] ss:$0 sm:$0xff]  ;;  %s1238_s15 = scalar_lea.hbm %s1291_s3, %s765_s6  ;;  %s1232_s24 = int_to_ptr.vmem [resolvable:$true] %s620_s24 }
  0x50   : > { %784 = vmatprep.subr.mxu0 %v1058_v0  ;;  %789 = vmatprep.subr.mxu1 %v1058_v0  ;;  %s604_s9 = scalar_lea.sflag [#allocation4], %s1205_s28  ;;  %s965_s21 = scalar_lea.vmem %s1232_s24, 512 }
  0x51   : > { %p966_p8 = scmp.ne.s32.totalorder %s1232_s24, %s965_s21  ;;  %s1060_s10 = smov [#allocation8]  }
  0x52   : > { %777 = vmatmul.mubr.msk.f32.vlgmr.msra.gmra.mxu0 %vm269_vm1, %v260_v3  ;;  %782 = vmatmul.mubr.msk.f32.vlgmr.msra.gmra.mxu1 %vm269_vm1, %v260_v3  ;;  %s969_s11 = sshll.u32 %s1060_s10, 4  ;;  %s970_s11 = int_to_ptr.vmem [resolvable:$false] %s969_s11 }
  0x53   : > { %785 = vmatpush3.xpose.msk.msra.mxu0 %vm269_vm1, %v434_v4  ;;  %790 = vmatpush3.xpose.msk.msra.mxu1 %vm269_vm1, %v519_v5  ;;  %p967_p9 = pnand %p966_p8, %p1178_p7  ;;  %s971_s18 = scalar_lea.vmem %s970_s11, 1024 }
  0x54   : > { %786 = vmatprep.mubr.msk.f32.mxu0 %vm1059_vm0, %v1058_v0  ;;  %791 = vmatprep.mubr.msk.f32.mxu1 %vm1059_vm0, %v1058_v0  ;;  %p972_p2 = scmp.lt.s32.totalorder %s1232_s24, %s970_s11  ;;  %p973_p13 = scmp.lt.s32.totalorder %s971_s18, %s965_s21 }
  0x55   : > { %p968_p11 = pneg %p967_p9 }
  0x56   : > { %787 = vmatmul.mubr.msk.f32.vlgmr.msra.gmra.mxu0 %vm269_vm1, %v260_v3  ;;  %792 = vmatmul.mubr.msk.f32.vlgmr.msra.gmra.mxu1 %vm269_vm1, %v260_v3  ;;  %p974_p0 = por %p973_p13, %p972_p2 }
  0x58   : > { %p975_p5 = pnand %p974_p0, %p968_p11 }
 0x112   : > { %v342_v8 = vpop.f32.mrf.mxu0  ;;  %v427_v9 = vpop.f32.mrf.mxu1 }
 0x113   : > { %v343_v10 = vadd.f32 %v745_v6, %v342_v8  ;;  %v428_v11 = vadd.f32 %v748_v7, %v427_v9 }
 0x114   : > { %v778_v12 = vpop.f32.mrf.mxu0  ;;  %v783_v13 = vpop.f32.mrf.mxu1 }
 0x115   : > { %347 = vst.msk [vmem:[%s256_s22] sm:$0xff] %vm346_vm2, %v343_v10  ;;  %751 = vst.msk [vmem:[%s256_s22 + $0x8] sm:$0xff] %vm346_vm2, %v428_v11 }
 0x116   : > { %v512_v16 = vpop.f32.mrf.mxu0  ;;  %v597_v17 = vpop.f32.mrf.mxu1 }
 0x117   : > { %v513_v18 = vadd.f32 %v752_v14, %v512_v16  ;;  %v598_v19 = vadd.f32 %v756_v15, %v597_v17 }
 0x118   : > { %v788_v20 = vpop.f32.mrf.mxu0  ;;  %v793_v21 = vpop.f32.mrf.mxu1 }
 0x119   : > { %755 = vst.msk [vmem:[%s256_s22 + $0x10] sm:$0xff] %vm346_vm2, %v513_v18  ;;  %759 = vst.msk [vmem:[%s256_s22 + $0x18] sm:$0xff] %vm346_vm2, %v598_v19 }
 0x11a   : > { %978 = shalt.err (!%p975_p5)
}
 0x11b   : > { %s979_s25 = scalar_lea.hbm %s1238_s15, 512  ;;  %s983_s30 = scalar_lea.hbm %s1291_s3, 1024 }
 0x11c   : > { %p980_p10 = scmp.ne.s32.totalorder %s1238_s15, %s979_s25  ;;  %p984_p6 = scmp.lt.s32.totalorder %s1238_s15, %s1291_s3 }
 0x11d   : > { %p985_p12 = scmp.lt.s32.totalorder %s983_s30, %s979_s25 }
 0x11e   : > { %p981_p1 = pnand %p980_p10, %p1178_p7 }
 0x11f   : > { %p986_p3 = por %p985_p12, %p984_p6 }
 0x120   : > { %p982_p4 = pneg %p981_p1 }
 0x122   : > { %p987_p8 = pnand %p986_p3, %p982_p4 }
 0x124   : > { %990 = shalt.err (!%p987_p8)
}
 0x125   : > { %s1061_s22 = smov 128   ;;  %s1062_s6 = smov 8  }
 0x126   : > { %804 = dma.vmem_to_hbm [thread:$0]  (%p1178_p7), %s1232_s24, 512, %s1238_s15, %s604_s9, %s1061_s22, %s1061_s22, %s1062_s6  }
 0x127 PF: > { %s635_s7 = sand.u32 1, %s1029_s12   ;;  %p1305_p9 = scmp.ne.s32.totalorder %s1298_s23, 0 }
 0x128   : > { %p1306_p11 = scmp.ge.s32.totalorder %s1049_s17, 2  ;;  %s636_s8 = scalar_lea.sflag [#allocation4], %s635_s7 }
 0x12a   : > { %p818_p2 = pnand %p1306_p11, %p1305_p9 }
 0x12c   : > { %p819_p13 = pneg %p818_p2 }
 0x12e   : > { %1024 = dma.done.wait (%p819_p13), %s636_s8, 512  }
 0x12f   : > { %1026 = vsyncadd (%p819_p13), %s636_s8, 4294966784  ;;  %s20_s17 = sadd.s32 1, %s1049_s17   ;;  %s1307_s12 = smov %s1033_s13 }
 0x130   : > { %p17_p0 = scmp.ge.s32.totalorder %s20_s17, 4   ;;  %s1308_s13 = smov %s1037_s14 }
 0x131   : > { %s1309_s14 = smov %s1187_s4  ;;  %s1310_s15 = smov %s1045_s16 }
 0x132   : > { %s1311_s16 = smov %s1313_s19  ;;  %19 = sbr.rel (!%p17_p0) target bundleno = 7 (0x7), region = 96 }
 0x137   :  { %641 = vsyncpa [#allocation3], 1 }
 0x138   :  { %643 = vsyncpa [#allocation3 + $0x1], 1 }
 0x139   :  { %644 = vsyncpa [#allocation6], 1 }
 0x13a   :  { %645 = vsyncpa [#allocation4], 1 }
 0x13b   :  { %647 = vsyncpa [#allocation4 + $0x1], 1 }

</bundles_post_ra>
